<compile_context>
chip_gen: v7x
topology: tpu7x:2x2x1
jax: 0.10.0
libtpu: 0.0.40
codegen_flags: <defaults>
</compile_context>

<pallas_src>
import functools

import jax
import jax.numpy as jnp
from jax.experimental import pallas as pl
from jax.experimental.pallas import tpu as pltpu

_LANE = 128
_MAX_BLOCK_ROWS = 512  # 512*128 lanes per channel per block (~1 MiB f32 @ C_in=4)


def _round_up(x, m):
    return ((x + m - 1) // m) * m


def _rollnet_kernel(w_ref, b_ref, x_ref, o_ref):
    # w_ref: (C_out, C_in) f32 in SMEM;  b_ref: (C_out,) f32 in SMEM
    # x_ref: (1, C_in, S, 128) VMEM;     o_ref: (1, C_out, S, 128) VMEM
    c_in = x_ref.shape[1]
    c_out = o_ref.shape[1]
    for o in range(c_out):
        acc = x_ref[0, 0].astype(jnp.float32) * w_ref[o, 0] + b_ref[o]
        for c in range(1, c_in):
            acc = acc + x_ref[0, c].astype(jnp.float32) * w_ref[o, c]
        o_ref[0, o] = jnp.tanh(acc).astype(o_ref.dtype)


@jax.jit
def rollnet_forward(x_nchw, weight, bias):
    """x_nchw: (N, C_in, H, W); weight: (C_out, C_in, 1, 1); bias: (C_out,)."""
    N, C_in, H, W = x_nchw.shape
    C_out = weight.shape[0]
    hw = H * W

    # Choose a lane-aligned spatial tiling (no padding when hw is 128-aligned
    # and small; near-minimal padding otherwise).
    rows = -(-hw // _LANE)                       # ceil(hw / 128)
    num_tiles = -(-rows // _MAX_BLOCK_ROWS)      # hw tiles per sample
    if num_tiles == 1:
        s_rows = rows
    else:
        s_rows = _round_up(-(-rows // num_tiles), 8)
    rows_pad = s_rows * num_tiles
    hw_pad = rows_pad * _LANE

    # (N, C_in, H, W) -> (N, C_in, hw) is a free, contiguous reshape.
    x3 = x_nchw.reshape(N, C_in, hw)
    if hw_pad != hw:
        x3 = jnp.pad(x3, ((0, 0), (0, 0), (0, hw_pad - hw)))
    x4 = x3.reshape(N, C_in, rows_pad, _LANE)

    w2d = weight.reshape(C_out, C_in).astype(jnp.float32)   # SMEM scalars
    b1d = bias.reshape(C_out).astype(jnp.float32)           # SMEM scalars

    grid = (N, num_tiles)

    out4 = pl.pallas_call(
        _rollnet_kernel,
        out_shape=jax.ShapeDtypeStruct((N, C_out, rows_pad, _LANE), x_nchw.dtype),
        grid_spec=pltpu.PrefetchScalarGridSpec(
            num_scalar_prefetch=0,
            grid=grid,
            in_specs=[
                pl.BlockSpec(memory_space=pltpu.MemorySpace.SMEM),   # weights
                pl.BlockSpec(memory_space=pltpu.MemorySpace.SMEM),   # bias
                pl.BlockSpec((1, C_in, s_rows, _LANE), lambda n, j: (n, 0, j, 0)),
            ],
            out_specs=pl.BlockSpec((1, C_out, s_rows, _LANE),
                                   lambda n, j: (n, 0, j, 0)),
        ),
        compiler_params=pltpu.CompilerParams(
            dimension_semantics=("parallel", "parallel")),
    )(w2d, b1d, x4)

    out3 = out4.reshape(N, C_out, hw_pad)
    if hw_pad != hw:
        out3 = out3[:, :, :hw]
    return out3.reshape(N, C_out, H, W)


def init_rollnet_params(key, in_channels, out_channels=1, dtype=jnp.float32):
    """Deterministic init mimicking nn.Conv2d defaults (kaiming-uniform-ish)."""
    kw, kb = jax.random.split(key)
    fan_in = in_channels * 1 * 1
    bound = 1.0 / jnp.sqrt(fan_in)
    weight = jax.random.uniform(
        kw, (out_channels, in_channels, 1, 1), dtype, minval=-bound, maxval=bound)
    bias = jax.random.uniform(
        kb, (out_channels,), dtype, minval=-bound, maxval=bound)
    return weight, bias


if __name__ == "__main__":
    key = jax.random.PRNGKey(0)
    k_x, k_p = jax.random.split(key)

    N, C_in, H, W = 2, 4, 16, 16
    C_out = 1

    x = jax.random.normal(k_x, (N, C_in, H, W), dtype=jnp.float32)
    weight, bias = init_rollnet_params(k_p, C_in, C_out)

    out = rollnet_forward(x, weight, bias)
    out = jax.block_until_ready(out)

    # Reference check in plain JAX (1x1 conv == channel matmul) + tanh.
    ref = jnp.tanh(
        jnp.einsum("nchw,oc->nohw", x, weight.reshape(C_out, C_in))
        + bias.reshape(1, C_out, 1, 1))
    assert out.shape == (N, C_out, H, W)
    assert jnp.allclose(out, ref, atol=1e-5, rtol=1e-5)

    print("KERNEL_OK")
</pallas_src>

<mosaic_0001>
module attributes {stable_mosaic.version = 11 : i64} {
  func.func @_rollnet_kernel(%arg0: i32, %arg1: i32, %arg2: memref<1x4xf32, #tpu.memory_space<smem>>, %arg3: memref<1xf32, #tpu.memory_space<smem>>, %arg4: memref<1x4x2x128xf32, #tpu.memory_space<vmem>>, %arg5: memref<1x1x2x128xf32, #tpu.memory_space<vmem>>) attributes {dimension_semantics = [#tpu.dimension_semantics<parallel>, #tpu.dimension_semantics<parallel>], iteration_bounds = array<i64: 2, 1>, scalar_prefetch = 0 : i64, scratch_operands = 0 : i64, tpu.core_type = #tpu.core_type<tc>, window_params = [{transform_indices = @transform_0, window_bounds = array<i64: 1, 4>}, {transform_indices = @transform_1, window_bounds = array<i64: 1>}, {transform_indices = @transform_2, window_bounds = array<i64: 1, 4, 2, 128>}, {transform_indices = @transform_3, window_bounds = array<i64: 1, 1, 2, 128>}]} {
    %c0 = arith.constant 0 : index
    %c0_0 = arith.constant 0 : index
    %c0_1 = arith.constant 0 : index
    %c0_2 = arith.constant 0 : index
    %0 = vector.load %arg4[%c0, %c0_0, %c0_1, %c0_2] : memref<1x4x2x128xf32, #tpu.memory_space<vmem>>, vector<1x1x2x128xf32>
    %1 = vector.shape_cast %0 : vector<1x1x2x128xf32> to vector<2x128xf32>
    %c0_3 = arith.constant 0 : index
    %c0_4 = arith.constant 0 : index
    %2 = memref.load %arg2[%c0_3, %c0_4] : memref<1x4xf32, #tpu.memory_space<smem>>
    %3 = vector.broadcast %2 : f32 to vector<2x128xf32>
    %4 = arith.mulf %1, %3 : vector<2x128xf32>
    %c0_5 = arith.constant 0 : index
    %5 = memref.load %arg3[%c0_5] : memref<1xf32, #tpu.memory_space<smem>>
    %6 = vector.broadcast %5 : f32 to vector<2x128xf32>
    %7 = arith.addf %4, %6 : vector<2x128xf32>
    %c0_6 = arith.constant 0 : index
    %c1 = arith.constant 1 : index
    %c0_7 = arith.constant 0 : index
    %c0_8 = arith.constant 0 : index
    %8 = vector.load %arg4[%c0_6, %c1, %c0_7, %c0_8] : memref<1x4x2x128xf32, #tpu.memory_space<vmem>>, vector<1x1x2x128xf32>
    %9 = vector.shape_cast %8 : vector<1x1x2x128xf32> to vector<2x128xf32>
    %c0_9 = arith.constant 0 : index
    %c1_10 = arith.constant 1 : index
    %10 = memref.load %arg2[%c0_9, %c1_10] : memref<1x4xf32, #tpu.memory_space<smem>>
    %11 = vector.broadcast %10 : f32 to vector<2x128xf32>
    %12 = arith.mulf %9, %11 : vector<2x128xf32>
    %13 = arith.addf %7, %12 : vector<2x128xf32>
    %c0_11 = arith.constant 0 : index
    %c2 = arith.constant 2 : index
    %c0_12 = arith.constant 0 : index
    %c0_13 = arith.constant 0 : index
    %14 = vector.load %arg4[%c0_11, %c2, %c0_12, %c0_13] : memref<1x4x2x128xf32, #tpu.memory_space<vmem>>, vector<1x1x2x128xf32>
    %15 = vector.shape_cast %14 : vector<1x1x2x128xf32> to vector<2x128xf32>
    %c0_14 = arith.constant 0 : index
    %c2_15 = arith.constant 2 : index
    %16 = memref.load %arg2[%c0_14, %c2_15] : memref<1x4xf32, #tpu.memory_space<smem>>
    %17 = vector.broadcast %16 : f32 to vector<2x128xf32>
    %18 = arith.mulf %15, %17 : vector<2x128xf32>
    %19 = arith.addf %13, %18 : vector<2x128xf32>
    %c0_16 = arith.constant 0 : index
    %c3 = arith.constant 3 : index
    %c0_17 = arith.constant 0 : index
    %c0_18 = arith.constant 0 : index
    %20 = vector.load %arg4[%c0_16, %c3, %c0_17, %c0_18] : memref<1x4x2x128xf32, #tpu.memory_space<vmem>>, vector<1x1x2x128xf32>
    %21 = vector.shape_cast %20 : vector<1x1x2x128xf32> to vector<2x128xf32>
    %c0_19 = arith.constant 0 : index
    %c3_20 = arith.constant 3 : index
    %22 = memref.load %arg2[%c0_19, %c3_20] : memref<1x4xf32, #tpu.memory_space<smem>>
    %23 = vector.broadcast %22 : f32 to vector<2x128xf32>
    %24 = arith.mulf %21, %23 : vector<2x128xf32>
    %25 = arith.addf %19, %24 : vector<2x128xf32>
    %26 = math.tanh %25 : vector<2x128xf32>
    %c0_21 = arith.constant 0 : index
    %c0_22 = arith.constant 0 : index
    %c0_23 = arith.constant 0 : index
    %c0_24 = arith.constant 0 : index
    %27 = vector.load %arg5[%c0_21, %c0_22, %c0_23, %c0_24] : memref<1x1x2x128xf32, #tpu.memory_space<vmem>>, vector<1x1x2x128xf32>
    %28 = vector.shape_cast %27 : vector<1x1x2x128xf32> to vector<2x128xf32>
    %29 = vector.shape_cast %26 : vector<2x128xf32> to vector<1x1x2x128xf32>
    tpu.vector_store %arg5[%c0_21, %c0_22, %c0_23, %c0_24], %29 {strides = array<i32>} : memref<1x1x2x128xf32, #tpu.memory_space<vmem>>, vector<1x1x2x128xf32>,
    return
  }
  func.func @transform_0(%arg0: i32, %arg1: i32) -> (i32, i32) {
    %c0_i32 = arith.constant 0 : i32
    %c0_i32_0 = arith.constant 0 : i32
    %c0_i32_1 = arith.constant 0 : i32
    return %c0_i32, %c0_i32_0 : i32, i32
  }
  func.func @transform_1(%arg0: i32, %arg1: i32) -> i32 {
    %c0_i32 = arith.constant 0 : i32
    %c0_i32_0 = arith.constant 0 : i32
    return %c0_i32 : i32
  }
  func.func @transform_2(%arg0: i32, %arg1: i32) -> (i32, i32, i32, i32) {
    %c0_i32 = arith.constant 0 : i32
    %c0_i32_0 = arith.constant 0 : i32
    %c0_i32_1 = arith.constant 0 : i32
    return %arg0, %c0_i32, %arg1, %c0_i32_0 : i32, i32, i32, i32
  }
  func.func @transform_3(%arg0: i32, %arg1: i32) -> (i32, i32, i32, i32) {
    %c0_i32 = arith.constant 0 : i32
    %c0_i32_0 = arith.constant 0 : i32
    %c0_i32_1 = arith.constant 0 : i32
    return %arg0, %c0_i32, %arg1, %c0_i32_0 : i32, i32, i32, i32
  }
}

</mosaic_0001>

<bundles_post_ra>
// kernel: rollnet_forward.1
= control target key start
LH: loop header
LB: loop body
LE: loop exit
PB: predicated region body
PF: predicated region fallthrough
CT: control target
= control target key end

     0   :  { %s514_s0 = inlined_call_operand.vmem [shape: f32[1,4], index: 0, kind: input, shape index: {}]   ;;  %s515_s1 = inlined_call_operand.<no memory space> [shape: f32[1], index: 1, kind: input, shape index: {}]   ;;  %s516_s2 = inlined_call_operand.vmem [shape: f32[2,4,2,128], index: 2, kind: input, shape index: {}]   ;;  %s517_s3 = inlined_call_operand.vmem [shape: f32[2,1,2,128], index: 3, kind: output, shape index: {}]  }
   0x1   :  { %8 = sst [smem:[#allocation2]] %s515_s1 }
   0x2   :  { %9 = vsyncpa [#allocation4], 0  ;;  %s455_s14 = smov 0   ;;  %s457_s15 = smov 0  }
   0x3   :  { %s459_s16 = smov 0  }
   0x4 LB: > { %s332_s1 = sadd.s32 4294967295, %s429_s16   ;;  %s27_s17 = sadd.s32 1, %s425_s15  ;;  %s429_s16 = sphi %s459_s16, %s15_s16   ;;  %s425_s15 = sphi %s457_s15, %s521_s15   ;;  %s421_s14 = sphi %s455_s14, %s520_s14  }
   0x5   : > { %p29_p0 = scmp.ge.s32.totalorder %s27_s17, 2  ;;  %p334_p1 = scmp.ge.s32.totalorder %s429_s16, 1 }
   0x6   : > { %p130_p2 = scmp.lt.s32.totalorder %s429_s16, 3  ;;  %p480_p4 = scmp.eq.s32.totalorder %s332_s1, 0 }
   0x7   : > { %s523_s17 = smov (%p29_p0, %s27_s17), 0  ;;  %s143_s22 = sshll.u32 %s514_s0, 4  ;;  %s144_s22 = int_to_ptr.vmem [resolvable:$true] %s143_s22 }
   0x8   : > { %p476_p3 = pnand %p334_p1, %p130_p2  ;;  %s388_s23 = scalar_lea.vmem %s144_s22, 16 }
   0x9   : > { %p389_p7 = scmp.ne.s32.totalorder %s144_s22, %s388_s23  ;;  %p396_p11 = scmp.lt.s32.totalorder %s144_s22, %s144_s22 }
   0xa   : > { %p355_p5 = pneg %p476_p3  ;;  %p397_p12 = scmp.lt.s32.totalorder %s388_s23, %s388_s23 }
   0xc   : > { %p356_p6 = pnand %p480_p4, %p355_p5  ;;  %p398_p13 = por %p397_p12, %p396_p11 }
   0xe   : > { %p390_p8 = pneg %p356_p6 }
  0x10   : > { %p391_p9 = pnand %p390_p8, %p389_p7 }
  0x12   : > { %p392_p10 = pneg %p391_p9 }
  0x14   : > { %p399_p0 = pnand %p398_p13, %p392_p10 }
  0x16   : > { %402 = shalt.err (!%p399_p0)
}
  0x17   : > { %s431_s24 = smov [#allocation3]   ;;  %170 = sbr.rel (%p476_p3) target bundleno = 62 (0x3e), region = 32 }
  0x18   : > { %358 = dma.vmem_to_smem (!%p356_p6), %s144_s22, 16, %s431_s24, [#allocation4]  }
  0x1e   : > { %416 = dma.done.wait (%p480_p4), [#allocation4], 16  }
  0x1f   : > { %418 = vsyncadd (%p480_p4), [#allocation4], 4294967280 }
  0x20   : > { %176 = sfence }
  0x21   : > { %p200_p1 = scmp.lt.s32.totalorder %s421_s14, 1  ;;  %s216_s25 = sld [smem:[#allocation3]] }
  0x22   : > { %s219_s26 = sld [smem:[#allocation2]]  ;;  %s343_s27 = sld [smem:[#allocation3 + $0x1]] }
  0x23   : > { %s525_s14 = smov (!%p200_p1, %s421_s14), 1  ;;  %s345_s28 = sld [smem:[#allocation3 + $0x2]] }
  0x24   : > { %s347_s29 = sld [smem:[#allocation3 + $0x3]]  ;;  %s350_s30 = sshll.u32 %s525_s14, 3 }
  0x25   : > { %s207_s6 = scalar_lea.vmem %s516_s2, %s350_s30  ;;  %s341_s7 = sshll.u32 %s525_s14, 1 }
  0x26   : > { %v215_v0 = vld [vmem:[%s207_s6] sm:$0x3]  ;;  %v342_v2 = vld [vmem:[%s207_s6 + $0x2] sm:$0x3]  ;;  %v344_v6 = vld [vmem:[%s207_s6 + $0x4] sm:$0x3]  ;;  %s214_s10 = scalar_lea.vmem %s517_s3, %s341_s7 }
  0x27   : > { %v217_v1 = vstv %s216_s25  ;;  %v346_v8 = vld [vmem:[%s207_s6 + $0x6] sm:$0x3] }
  0x28   : > { %v218_v3 = vmul.f32 %v217_v1, %v215_v0  ;;  %v220_v4 = vstv %s219_s26  ;;  %v225_v5 = vstv %s343_s27 }
  0x29   : > { %v226_v7 = vmul.f32 %v342_v2, %v225_v5  ;;  %v231_v10 = vstv %s345_s28 }
  0x2a   : > { %v221_v9 = vadd.f32 %v220_v4, %v218_v3  ;;  %v237_v11 = vstv %s347_s29  ;;  %v232_v12 = vmul.f32 %v344_v6, %v231_v10 }
  0x2b   : > { %v238_v14 = vmul.f32 %v346_v8, %v237_v11 }
  0x2c   : > { %v227_v13 = vadd.f32 %v226_v7, %v221_v9 }
  0x2e   : > { %v233_v15 = vadd.f32 %v232_v12, %v227_v13 }
  0x30   : > { %v239_v16 = vadd.f32 %v238_v14, %v233_v15 }
  0x32   : > { %386 = vtanh.f32 %v239_v16 }
  0x3c   : > { %v387_v17 = vpop.eup %386 }
  0x3d   : > { %241 = vst [vmem:[%s214_s10] sm:$0x3] %v387_v17 }
  0x3e PF: > { %s15_s16 = sadd.s32 1, %s429_s16   ;;  %s520_s14 = smov %s425_s15 }
  0x3f   : > { %p12_p2 = scmp.ge.s32.totalorder %s15_s16, 4   ;;  %s521_s15 = smov %s523_s17 }
  0x41   :  { %14 = sbr.rel (!%p12_p2) target bundleno = 4 (0x4), region = 70 }
  0x48   :  { %267 = vsyncpa [#allocation4], 1 }
  0x49   :  { %269 = vsyncpa [#allocation4 + $0x1], 1 }

</bundles_post_ra>
